<compile_context>
chip_gen: v5e
topology: v5e:2x2
jax: 0.10.0
libtpu: 0.0.40
codegen_flags: <defaults>
</compile_context>

<pallas_src>
import functools

import jax
import jax.numpy as jnp
from jax.experimental import pallas as pl
from jax.experimental.pallas import tpu as pltpu

LANES = 128
TARGET_BLOCK_ROWS = 4096          # 4096 x 128 x 4 B = 2 MiB f32 per input block
SENTINEL_LOGIT = -1e4             # sigmoid == 0 and softplus == 0 -> exactly 0 loss


def _fold_rows(v, acc_rows):
    """Sum groups of `acc_rows` rows: (k*acc_rows, L) -> (acc_rows, L). VPU adds only."""
    block_rows = v.shape[0]
    if block_rows == acc_rows:
        return v
    part = v[0:acc_rows]
    for j in range(1, block_rows // acc_rows):
        part = part + v[j * acc_rows:(j + 1) * acc_rows]
    return part


def _focal_loss_kernel(logits_ref, targets_ref, out_ref, acc_ref, *,
                       alpha, gamma, block_rows, acc_rows, valid_rows,
                       steps_per_core):
    c = pl.program_id(0)          # partial-sum / core index ("parallel")
    i = pl.program_id(1)          # row-block step within the core ("arbitrary")

    @pl.when(i == 0)
    def _():
        acc_ref[...] = jnp.zeros_like(acc_ref)

    x = logits_ref[...].astype(jnp.float32)
    t = targets_ref[...].astype(jnp.float32)

    # Shared exp(-|x|) feeds both the stable BCE-with-logits term and sigmoid.
    z = jnp.exp(-jnp.abs(x))
    zp1 = 1.0 + z
    ce = jnp.maximum(x, 0.0) - x * t + jnp.log(zp1)     # z in (0,1]: well conditioned
    inv = pl.reciprocal(zp1, approx=True)               # EUP vrcp; frees VALU slots
    prob = jnp.where(x >= 0.0, inv, z * inv)            # == sigmoid(x)

    # Constant-folded:  w == 1 - p_t,   alpha_t == alpha*t + (1-alpha)*(1-t)
    w = prob + t - 2.0 * prob * t
    alpha_t = (1.0 - alpha) + (2.0 * alpha - 1.0) * t
    if gamma == 2.0:
        focal = w * w                                   # fast path: no pow/exp/log
    elif gamma == 1.0:
        focal = w
    else:
        focal = w ** gamma                              # gamma > 0 assumed
    loss = alpha_t * ce * focal

    # Rows of this block that hold real data (row units -> no int32 overflow):
    #   rem >= block_rows   : full block (common case)  -> unmasked accumulate
    #   0 < rem < block_rows: final overhang block      -> row-masked accumulate
    #   rem <= 0            : phantom block from grid round-up (index_map is
    #                         clamped to the last real block) -> contributes 0
    rem = valid_rows - (c * steps_per_core + i) * block_rows

    @pl.when(rem >= block_rows)
    def _():
        acc_ref[...] += _fold_rows(loss, acc_rows)

    @pl.when(rem < block_rows)
    def _():
        row_ids = jax.lax.broadcasted_iota(jnp.int32, loss.shape, 0)
        masked = jnp.where(row_ids < rem, loss, 0.0)
        acc_ref[...] += _fold_rows(masked, acc_rows)

    @pl.when(i == pl.num_programs(1) - 1)
    def _():
        out_ref[...] = jnp.reshape(jnp.sum(acc_ref[...]), (1, 1, 1))


def focal_loss(logits, targets, *, alpha=0.7, gamma=2.0, reduction="mean",
               block_rows=None):
    assert logits.shape == targets.shape
    numel = int(logits.size)

    # Lane-dense (rows, 128) slab; free reshape when numel % 128 == 0 (common
    # NCHW case).  The lane tail (if any) is padded with a sentinel that
    # contributes exactly 0 loss, so the kernel needs no lane mask.
    flat_l = jnp.ravel(logits)
    flat_t = jnp.ravel(targets)
    pad = (-numel) % LANES
    if pad:
        flat_l = jnp.pad(flat_l, (0, pad), constant_values=SENTINEL_LOGIT)
        flat_t = jnp.pad(flat_t, (0, pad), constant_values=0)
    rows = (numel + pad) // LANES
    l2d = flat_l.reshape(rows, LANES)
    t2d = flat_t.reshape(rows, LANES)

    # Row blocks: one full-extent block, or TARGET_BLOCK_ROWS-row blocks
    # (multiple of 32 -> safe sublane packing for bf16 / int8 inputs too).
    if block_rows is None:
        block_rows = TARGET_BLOCK_ROWS
    block_rows = min(block_rows, rows)
    assert block_rows == rows or block_rows % 32 == 0
    nblocks = (rows + block_rows - 1) // block_rows

    # Two partial sums when there is more than one block: the "parallel" axis
    # uses both TensorCores on v7x and is a plain serial loop on v5e/v6e.
    num_cores = 2 if nblocks >= 2 else 1
    steps_per_core = (nblocks + num_cores - 1) // num_cores

    # Small accumulator (<= 128 rows): enough independent add chains for ILP,
    # ~30x less per-step accumulator VMEM traffic than a block-shaped one.
    acc_rows = block_rows
    for cand in (128, 64, 32, 16, 8):
        if block_rows % cand == 0:
            acc_rows = cand
            break

    def row_block_map(c, i):
        # Clamp so the phantom block (grid round-up) re-reads the last real
        # block instead of running past the array; its contribution is masked.
        return (jnp.minimum(c * steps_per_core + i, nblocks - 1), 0)

    kernel = functools.partial(
        _focal_loss_kernel, alpha=float(alpha), gamma=float(gamma),
        block_rows=block_rows, acc_rows=acc_rows, valid_rows=rows,
        steps_per_core=steps_per_core)

    partials = pl.pallas_call(
        kernel,
        out_shape=jax.ShapeDtypeStruct((num_cores, 1, 1), jnp.float32),
        grid_spec=pltpu.PrefetchScalarGridSpec(
            num_scalar_prefetch=0,
            grid=(num_cores, steps_per_core),
            in_specs=[
                pl.BlockSpec((block_rows, LANES), row_block_map),
                pl.BlockSpec((block_rows, LANES), row_block_map),
            ],
            out_specs=pl.BlockSpec((1, 1, 1), lambda c, i: (c, 0, 0)),
            scratch_shapes=[pltpu.VMEM((acc_rows, LANES), jnp.float32)],
        ),
        compiler_params=pltpu.CompilerParams(
            dimension_semantics=("parallel", "arbitrary"),
            vmem_limit_bytes=32 * 1024 * 1024),
    )(l2d, t2d)

    total = jnp.sum(partials)
    return total / numel if reduction == "mean" else total


def focal_loss_ref(logits, targets, alpha=0.7, gamma=2.0, reduction="mean"):
    x = logits.astype(jnp.float32)
    t = targets.astype(jnp.float32)
    prob = jax.nn.sigmoid(x)
    ce = jnp.maximum(x, 0.0) - x * t + jnp.log1p(jnp.exp(-jnp.abs(x)))
    p_t = prob * t + (1 - prob) * (1 - t)
    alpha_t = alpha * t + (1 - alpha) * (1 - t)
    loss = alpha_t * ce * (1 - p_t) ** gamma
    return jnp.mean(loss) if reduction == "mean" else jnp.sum(loss)


if __name__ == "__main__":
    key = jax.random.PRNGKey(0)
    k1, k2, k3, k4, k5, k6 = jax.random.split(key, 6)

    # pl.reciprocal(approx=True) is the accuracy limiter (it feeds prob/p_t/
    # focal, not ce); everything else agrees to ~1e-7.
    RTOL, ATOL = 5e-3, 1e-5

    # [B,C,H,W] segmentation-style head.
    logits = jax.random.normal(k1, (2, 4, 16, 16), dtype=jnp.float32)
    targets = (jax.random.uniform(k2, (2, 4, 16, 16)) > 0.5).astype(jnp.float32)

    out = jax.block_until_ready(focal_loss(logits, targets))
    ref = focal_loss_ref(logits, targets)
    assert jnp.allclose(out, ref, rtol=RTOL, atol=ATOL), (out, ref)

    out_sum = jax.block_until_ready(focal_loss(logits, targets, reduction="sum"))
    ref_sum = focal_loss_ref(logits, targets, reduction="sum")
    assert jnp.allclose(out_sum, ref_sum, rtol=RTOL, atol=1e-3), (out_sum, ref_sum)

    # Odd-sized input: exercises the sentinel lane padding.
    logits2 = jax.random.normal(k3, (3, 5, 7, 11), dtype=jnp.float32)
    targets2 = (jax.random.uniform(k4, (3, 5, 7, 11)) > 0.5).astype(jnp.float32)
    out2 = jax.block_until_ready(focal_loss(logits2, targets2))
    ref2 = focal_loss_ref(logits2, targets2)
    assert jnp.allclose(out2, ref2, rtol=RTOL, atol=ATOL), (out2, ref2)

    # Forced small blocks: exercises the 2-partial-sum "parallel" axis, the
    # row-masked overhang block and the clamped phantom block (5 blocks / 2 cores).
    logits3 = jax.random.normal(k5, (4, 8, 33, 37), dtype=jnp.float32)
    targets3 = (jax.random.uniform(k6, (4, 8, 33, 37)) > 0.5).astype(jnp.float32)
    out3 = jax.block_until_ready(focal_loss(logits3, targets3, block_rows=64))
    ref3 = focal_loss_ref(logits3, targets3)
    assert jnp.allclose(out3, ref3, rtol=RTOL, atol=ATOL), (out3, ref3)

    # bf16 inputs flow through the BlockSpec natively (narrow-dtype / v5e path).
    lb = logits.astype(jnp.bfloat16)
    tb = targets.astype(jnp.bfloat16)
    out4 = jax.block_until_ready(focal_loss(lb, tb))
    ref4 = focal_loss_ref(lb, tb)
    assert jnp.allclose(out4, ref4, rtol=RTOL, atol=ATOL), (out4, ref4)

    print("KERNEL_OK")
</pallas_src>

<mosaic_0001>
module attributes {stable_mosaic.version = 11 : i64} {
  func.func @_focal_loss_kernel(%arg0: i32, %arg1: i32, %arg2: memref<16x128xf32, #tpu.memory_space<vmem>>, %arg3: memref<16x128xf32, #tpu.memory_space<vmem>>, %arg4: memref<1x1x1xf32, #tpu.memory_space<vmem>>, %arg5: memref<16x128xf32, #tpu.memory_space<vmem>>) attributes {dimension_semantics = [#tpu.dimension_semantics<parallel>, #tpu.dimension_semantics<arbitrary>], iteration_bounds = array<i64: 1, 1>, scalar_prefetch = 0 : i64, scratch_operands = 1 : i64, tpu.core_type = #tpu.core_type<tc>, window_params = [{transform_indices = @transform_0, window_bounds = array<i64: 16, 128>}, {transform_indices = @transform_1, window_bounds = array<i64: 16, 128>}, {transform_indices = @transform_2, window_bounds = array<i64: 1, 1, 1>}]} {
    %c0_i32 = arith.constant 0 : i32
    %0 = arith.cmpi eq, %arg1, %c0_i32 : i32
    %1 = arith.extui %0 : i1 to i32
    %c0_i32_0 = arith.constant 0 : i32
    %2 = arith.cmpi ne, %1, %c0_i32_0 : i32
    scf.if %2 {
      %cst_17 = arith.constant 0.000000e+00 : f32
      %47 = vector.broadcast %cst_17 : f32 to vector<16x128xf32>
      %c0_18 = arith.constant 0 : index
      %c0_19 = arith.constant 0 : index
      %48 = vector.load %arg5[%c0_18, %c0_19] : memref<16x128xf32, #tpu.memory_space<vmem>>, vector<16x128xf32>
      tpu.vector_store %arg5[%c0_18, %c0_19], %47 {strides = array<i32>} : memref<16x128xf32, #tpu.memory_space<vmem>>, vector<16x128xf32>,
    } else {
    }
    %c0 = arith.constant 0 : index
    %c0_1 = arith.constant 0 : index
    %3 = vector.load %arg2[%c0, %c0_1] : memref<16x128xf32, #tpu.memory_space<vmem>>, vector<16x128xf32>
    %c0_2 = arith.constant 0 : index
    %c0_3 = arith.constant 0 : index
    %4 = vector.load %arg3[%c0_2, %c0_3] : memref<16x128xf32, #tpu.memory_space<vmem>>, vector<16x128xf32>
    %5 = math.absf %3 : vector<16x128xf32>
    %cst = arith.constant 0.000000e+00 : f32
    %6 = vector.broadcast %cst : f32 to vector<16x128xf32>
    %7 = arith.subf %6, %5 : vector<16x128xf32>
    %8 = math.exp %7 : vector<16x128xf32>
    %cst_4 = arith.constant 1.000000e+00 : f32
    %9 = vector.broadcast %cst_4 : f32 to vector<16x128xf32>
    %10 = arith.addf %9, %8 : vector<16x128xf32>
    %cst_5 = arith.constant 0.000000e+00 : f32
    %11 = vector.broadcast %cst_5 : f32 to vector<16x128xf32>
    %12 = arith.maximumf %3, %11 : vector<16x128xf32>
    %13 = arith.mulf %3, %4 : vector<16x128xf32>
    %14 = arith.subf %12, %13 : vector<16x128xf32>
    %15 = math.log %10 : vector<16x128xf32>
    %16 = arith.addf %14, %15 : vector<16x128xf32>
    %17 = tpu.reciprocal %10 {approx = true} : vector<16x128xf32> -> vector<16x128xf32>
    %cst_6 = arith.constant 0.000000e+00 : f32
    %18 = vector.broadcast %cst_6 : f32 to vector<16x128xf32>
    %19 = arith.cmpf oge, %3, %18 : vector<16x128xf32>
    %20 = arith.mulf %8, %17 : vector<16x128xf32>
    %21 = arith.select %19, %17, %20 : vector<16x128xi1>, vector<16x128xf32>
    %22 = arith.addf %21, %4 : vector<16x128xf32>
    %cst_7 = arith.constant 2.000000e+00 : f32
    %23 = vector.broadcast %cst_7 : f32 to vector<16x128xf32>
    %24 = arith.mulf %23, %21 : vector<16x128xf32>
    %25 = arith.mulf %24, %4 : vector<16x128xf32>
    %26 = arith.subf %22, %25 : vector<16x128xf32>
    %cst_8 = arith.constant 4.000000e-01 : f32
    %27 = vector.broadcast %cst_8 : f32 to vector<16x128xf32>
    %28 = arith.mulf %27, %4 : vector<16x128xf32>
    %cst_9 = arith.constant 3.000000e-01 : f32
    %29 = vector.broadcast %cst_9 : f32 to vector<16x128xf32>
    %30 = arith.addf %29, %28 : vector<16x128xf32>
    %31 = arith.mulf %26, %26 : vector<16x128xf32>
    %32 = arith.mulf %30, %16 : vector<16x128xf32>
    %33 = arith.mulf %32, %31 : vector<16x128xf32>
    %c1_i32 = arith.constant 1 : i32
    %34 = arith.muli %arg0, %c1_i32 : i32
    %35 = arith.addi %34, %arg1 : i32
    %c16_i32 = arith.constant 16 : i32
    %36 = arith.muli %35, %c16_i32 : i32
    %c16_i32_10 = arith.constant 16 : i32
    %37 = arith.subi %c16_i32_10, %36 : i32
    %c16_i32_11 = arith.constant 16 : i32
    %38 = arith.cmpi sge, %37, %c16_i32_11 : i32
    %39 = arith.extui %38 : i1 to i32
    %c0_i32_12 = arith.constant 0 : i32
    %40 = arith.cmpi ne, %39, %c0_i32_12 : i32
    scf.if %40 {
      %c0_17 = arith.constant 0 : index
      %c0_18 = arith.constant 0 : index
      %47 = vector.load %arg5[%c0_17, %c0_18] : memref<16x128xf32, #tpu.memory_space<vmem>>, vector<16x128xf32>
      %48 = arith.addf %47, %33 : vector<16x128xf32>
      %c0_19 = arith.constant 0 : index
      %c0_20 = arith.constant 0 : index
      %49 = vector.load %arg5[%c0_19, %c0_20] : memref<16x128xf32, #tpu.memory_space<vmem>>, vector<16x128xf32>
      tpu.vector_store %arg5[%c0_19, %c0_20], %48 {strides = array<i32>} : memref<16x128xf32, #tpu.memory_space<vmem>>, vector<16x128xf32>,
    } else {
    }
    %c16_i32_13 = arith.constant 16 : i32
    %41 = arith.cmpi slt, %37, %c16_i32_13 : i32
    %42 = arith.extui %41 : i1 to i32
    %c0_i32_14 = arith.constant 0 : i32
    %43 = arith.cmpi ne, %42, %c0_i32_14 : i32
    scf.if %43 {
      %47 = tpu.iota {dimensions = array<i32: 0>} : vector<16x128xi32>
      %48 = vector.broadcast %37 : i32 to vector<16x128xi32>
      %49 = arith.cmpi slt, %47, %48 : vector<16x128xi32>
      %cst_17 = arith.constant 0.000000e+00 : f32
      %50 = vector.broadcast %cst_17 : f32 to vector<16x128xf32>
      %51 = arith.select %49, %33, %50 : vector<16x128xi1>, vector<16x128xf32>
      %c0_18 = arith.constant 0 : index
      %c0_19 = arith.constant 0 : index
      %52 = vector.load %arg5[%c0_18, %c0_19] : memref<16x128xf32, #tpu.memory_space<vmem>>, vector<16x128xf32>
      %53 = arith.addf %52, %51 : vector<16x128xf32>
      %c0_20 = arith.constant 0 : index
      %c0_21 = arith.constant 0 : index
      %54 = vector.load %arg5[%c0_20, %c0_21] : memref<16x128xf32, #tpu.memory_space<vmem>>, vector<16x128xf32>
      tpu.vector_store %arg5[%c0_20, %c0_21], %53 {strides = array<i32>} : memref<16x128xf32, #tpu.memory_space<vmem>>, vector<16x128xf32>,
    } else {
    }
    %c0_i32_15 = arith.constant 0 : i32
    %44 = arith.cmpi eq, %arg1, %c0_i32_15 : i32
    %45 = arith.extui %44 : i1 to i32
    %c0_i32_16 = arith.constant 0 : i32
    %46 = arith.cmpi ne, %45, %c0_i32_16 : i32
    scf.if %46 {
      %c0_17 = arith.constant 0 : index
      %c0_18 = arith.constant 0 : index
      %47 = vector.load %arg5[%c0_17, %c0_18] : memref<16x128xf32, #tpu.memory_space<vmem>>, vector<16x128xf32>
      %48 = vector.shape_cast %47 : vector<16x128xf32> to vector<1x16x128xf32>
      %cst_19 = arith.constant dense<0.000000e+00> : vector<1xf32>
      %49 = vector.multi_reduction <add>, %48, %cst_19 [1, 2] : vector<1x16x128xf32> to vector<1xf32>
      %50 = vector.shape_cast %49 : vector<1xf32> to vector<1x1x1xf32>
      %51 = vector.extract %50[0, 0, 0] : f32 from vector<1x1x1xf32>
      %52 = vector.broadcast %51 : f32 to vector<1x1x1xf32>
      %c0_20 = arith.constant 0 : index
      %c0_21 = arith.constant 0 : index
      %c0_22 = arith.constant 0 : index
      %53 = vector.load %arg4[%c0_20, %c0_21, %c0_22] : memref<1x1x1xf32, #tpu.memory_space<vmem>>, vector<1x1x1xf32>
      tpu.vector_store %arg4[%c0_20, %c0_21, %c0_22], %52 {strides = array<i32>} : memref<1x1x1xf32, #tpu.memory_space<vmem>>, vector<1x1x1xf32>,
    } else {
    }
    return
  }
  func.func @transform_0(%arg0: i32, %arg1: i32) -> (i32, i32) {
    %c1_i32 = arith.constant 1 : i32
    %0 = arith.muli %arg0, %c1_i32 : i32
    %1 = arith.addi %0, %arg1 : i32
    %c0_i32 = arith.constant 0 : i32
    %2 = arith.minsi %1, %c0_i32 : i32
    %c0_i32_0 = arith.constant 0 : i32
    %c0_i32_1 = arith.constant 0 : i32
    return %2, %c0_i32_0 : i32, i32
  }
  func.func @transform_1(%arg0: i32, %arg1: i32) -> (i32, i32) {
    %c1_i32 = arith.constant 1 : i32
    %0 = arith.muli %arg0, %c1_i32 : i32
    %1 = arith.addi %0, %arg1 : i32
    %c0_i32 = arith.constant 0 : i32
    %2 = arith.minsi %1, %c0_i32 : i32
    %c0_i32_0 = arith.constant 0 : i32
    %c0_i32_1 = arith.constant 0 : i32
    return %2, %c0_i32_0 : i32, i32
  }
  func.func @transform_2(%arg0: i32, %arg1: i32) -> (i32, i32, i32) {
    %c0_i32 = arith.constant 0 : i32
    %c0_i32_0 = arith.constant 0 : i32
    %c0_i32_1 = arith.constant 0 : i32
    return %arg0, %c0_i32, %c0_i32_0 : i32, i32, i32
  }
}

</mosaic_0001>

<bundles_post_ra>
// kernel: tpu_custom_call.1
= control target key start
LH: loop header
LB: loop body
LE: loop exit
PB: predicated region body
PF: predicated region fallthrough
CT: control target
= control target key end

     0   :  { %7 = vsyncpa [#allocation4], 0  ;;  %s319_s0 = inlined_call_operand.hbm [shape: f32[16,128], index: 0, kind: input, shape index: {}]   ;;  %s320_s1 = inlined_call_operand.hbm [shape: f32[16,128], index: 1, kind: input, shape index: {}]   ;;  %s321_s2 = inlined_call_operand.hbm [shape: f32[1,1,1], index: 2, kind: output, shape index: {}]  }
   0x1   :  { %8 = vsyncpa [#allocation7], 0 }
   0x2   :  { %9 = vsyncpa [#allocation5], 0  ;;  %s20_s11 = sshll.u32 %s319_s0, 4  ;;  %s290_s12 = smov [#allocation3]   ;;  %s21_s11 = int_to_ptr.hbm [resolvable:$true] %s20_s11 }
   0x3   :  { %s22_s13 = sshll.u32 %s290_s12, 4  ;;  %s39_s16 = sshll.u32 %s320_s1, 4  ;;  %s23_s13 = int_to_ptr.vmem [resolvable:$true] %s22_s13  ;;  %s40_s16 = int_to_ptr.hbm [resolvable:$true] %s39_s16 }
   0x4   :  { %s291_s17 = smov 128   ;;  %s292_s18 = smov 8  }
   0x5   :  { %28 = dma.hbm_to_vmem [thread:$0]  %s21_s11, 256, %s23_s13, [#allocation4], %s291_s17, %s291_s17, %s292_s18  }
   0x6   :  { %s293_s19 = smov [#allocation6]  }
   0x7   :  { %s41_s20 = sshll.u32 %s293_s19, 4  ;;  %s42_s20 = int_to_ptr.vmem [resolvable:$true] %s41_s20 }
   0x8   :  { %47 = dma.hbm_to_vmem [thread:$0]  %s40_s16, 256, %s42_s20, [#allocation7], %s291_s17, %s291_s17, %s292_s18  }
   0x9   :  { %284 = dma.done.wait [#allocation4], 256  }
   0xa   :  { %285 = vsyncadd [#allocation4], 4294967040 }
   0xb   :  { %286 = dma.done.wait [#allocation7], 256  }
   0xc   :  { %287 = vsyncadd [#allocation7], 4294967040  ;;  %v70_v0 = vld [vmem:[#allocation3] sm:$0xff]  ;;  %v71_v1 = vld [vmem:[#allocation3 + $0x8] sm:$0xff]  ;;  %s294_s0 = smov [#allocation8]   ;;  %s178_s23 = sshll.u32 %s321_s2, 4  ;;  %s179_s23 = int_to_ptr.hbm [resolvable:$true] %s178_s23 }
   0xd   :  { %v74_v2 = vand.u32 2147483647, %v70_v0  ;;  %v75_v3 = vand.u32 2147483647, %v71_v1  ;;  %v72_v12 = vld [vmem:[#allocation6] sm:$0xff]  ;;  %v73_v13 = vld [vmem:[#allocation6 + $0x8] sm:$0xff] }
   0xe   :  { %v84_v14 = vmax.f32 %v70_v0, 0.0  ;;  %v86_v15 = vmul.f32 %v72_v12, %v70_v0  ;;  %v85_v16 = vmax.f32 %v71_v1, 0.0  ;;  %v87_v17 = vmul.f32 %v73_v13, %v71_v1  ;;  %s176_s1 = sshll.u32 %s294_s0, 4  ;;  %s177_s1 = int_to_ptr.vmem [resolvable:$true] %s176_s1 }
   0xf   :  { %v76_v4 = vsub.f32 0.0, %v74_v2  ;;  %v77_v5 = vsub.f32 0.0, %v75_v3  ;;  %v112_v20 = vmul.f32 0.4, %v72_v12  ;;  %vm98_vm0 = vcmp.ge.f32.partialorder %v70_v0, 0.0 }
  0x10   :  { %v88_v22 = vsub.f32 %v84_v14, %v86_v15  ;;  %vm99_vm1 = vcmp.ge.f32.partialorder %v71_v1, 0.0  ;;  %v89_v25 = vsub.f32 %v85_v16, %v87_v17  ;;  %v113_v28 = vmul.f32 0.4, %v73_v13 }
  0x11   :  { %v78_v6 = vmul.f32 1.442695, %v76_v4  ;;  %v80_v7 = vmul.f32 1.442695, %v77_v5  ;;  %v114_v31 = vadd.f32 0.3, %v112_v20 }
  0x12   :  { %v115_v39 = vadd.f32 0.3, %v113_v28  ;;  %vm169_vm2 = vcmask 0  }
  0x13   :  { %200 = vpow2.f32 %v78_v6 }
  0x14   :  { %202 = vpow2.f32 %v80_v7 }
  0x19   :  { %v201_v8 = vpop.eup %200 }
  0x1a   :  { %v203_v9 = vpop.eup %202  ;;  %v82_v10 = vadd.f32 1.0, %v201_v8 }
  0x1b   :  { %v83_v11 = vadd.f32 1.0, %v203_v9 }
  0x1c   :  { %204 = vlog2.f32 %v82_v10 }
  0x1d   :  { %206 = vlog2.f32 %v83_v11 }
  0x1e   :  { %208 = vrcp.f32 %v82_v10 }
  0x1f   :  { %210 = vrcp.f32 %v83_v11 }
  0x22   :  { %v205_v18 = vpop.eup %204 }
  0x23   :  { %v207_v19 = vpop.eup %206  ;;  %v91_v23 = vmul.f32 0.6931472, %v205_v18 }
  0x24   :  { %v209_v21 = vpop.eup %208  ;;  %v93_v26 = vmul.f32 0.6931472, %v207_v19 }
  0x25   :  { %v211_v24 = vpop.eup %210  ;;  %v100_v27 = vmul.f32 %v209_v21, %v201_v8  ;;  %v94_v32 = vadd.f32 %v91_v23, %v88_v22 }
  0x26   :  { %v101_v29 = vmul.f32 %v211_v24, %v203_v9  ;;  %v95_v36 = vadd.f32 %v93_v26, %v89_v25 }
  0x27   :  { %v102_v30 = vsel %vm98_vm0, %v209_v21, %v100_v27  ;;  %v118_v43 = vmul.f32 %v114_v31, %v94_v32 }
  0x28   :  { %v103_v33 = vsel %vm99_vm1, %v211_v24, %v101_v29  ;;  %v104_v34 = vadd.f32 %v102_v30, %v72_v12  ;;  %v106_v35 = vmul.f32 2.0, %v102_v30  ;;  %v119_v45 = vmul.f32 %v115_v39, %v95_v36 }
  0x29   :  { %v105_v37 = vadd.f32 %v103_v33, %v73_v13  ;;  %v107_v38 = vmul.f32 2.0, %v103_v33 }
  0x2a   :  { %v108_v40 = vmul.f32 %v106_v35, %v72_v12 }
  0x2b   :  { %v109_v41 = vmul.f32 %v107_v38, %v73_v13 }
  0x2c   :  { %v110_v42 = vsub.f32 %v104_v34, %v108_v40 }
  0x2d   :  { %v111_v44 = vsub.f32 %v105_v37, %v109_v41 }
  0x2e   :  { %v116_v46 = vmul.f32 %v110_v42, %v110_v42 }
  0x2f   :  { %v117_v47 = vmul.f32 %v111_v44, %v111_v44 }
  0x30   :  { %v120_v48 = vmul.f32 %v118_v43, %v116_v46 }
  0x31   :  { %v121_v49 = vmul.f32 %v119_v45, %v117_v47 }
  0x33   :  { %v158_v50 = vadd.f32 %v121_v49, %v120_v48 }
  0x35   :  { %159 = vadd.xlane.f32.xlu0 %v158_v50 }
  0xa8   :  { %v160_v51 = vpop.xlane.xlu0 %159 }
  0xa9   :  { %v161_v52 = vrot.slane %v160_v51, 4 }
  0xab   :  { %v162_v53 = vadd.f32 %v161_v52, %v160_v51 }
  0xad   :  { %v163_v54 = vrot.slane %v162_v53, 2 }
  0xaf   :  { %v164_v55 = vadd.f32 %v163_v54, %v162_v53 }
  0xb1   :  { %v165_v56 = vrot.slane %v164_v55, 1 }
  0xb3   :  { %v166_v57 = vadd.f32 %v165_v56, %v164_v55 }
  0xb5   :  { %193 = vpush %v166_v57 }
  0xe6   :  { %s194_s24 = spop %193 }
  0xe7   :  { %v168_v58 = vstv %s194_s24 }
  0xe8   :  { %170 = vst.msk [vmem:[#allocation8] sm:$0x1] %vm169_vm2, %v168_v58 }
  0xe9   :  { %181 = dma.vmem_to_hbm [thread:$0]  %s177_s1, 16, %s179_s23, [#allocation5]  }
  0xea   :  { %288 = dma.done.wait [#allocation5], 16  }
  0xeb   :  { %289 = vsyncadd [#allocation5], 4294967280 }
  0xec   :  { %186 = vsyncpa [#allocation4], 1 }
  0xed   :  { %187 = vsyncpa [#allocation7], 1 }
  0xee   :  { %188 = vsyncpa [#allocation5], 1 }

</bundles_post_ra>
